<compile_context>
chip_gen: v6e
topology: v6e:2x2x1
jax: 0.10.0
libtpu: 0.0.40
codegen_flags: <defaults>
</compile_context>

<pallas_src>
import jax
import jax.numpy as jnp
from jax.experimental import pallas as pl
from jax.experimental.pallas import tpu as pltpu

H1 = 400          # hidden size of self.input  (logical)
H2 = 300          # hidden size of self.fc1    (logical)
H1P = 512         # H1 padded to a lane multiple; also holds +/-action and the 1
H2P = 384         # H2 padded to a lane multiple; last column carries the 1 for b3


def _round_up(x, m):
    return ((x + m - 1) // m) * m


def _choose_tb(batch, max_tile):
    """Batch tile: 8-aligned for tiny batches, 128-aligned otherwise, capped at
    max_tile, and kept small enough that large batches get >= 2 grid steps
    (so the two v7x TensorCores both get work)."""
    if batch < 128:
        return _round_up(max(batch, 1), 8)
    if batch < 256:
        return 128
    n128 = _round_up(batch, 128) // 128
    tb_units = min(max(max_tile // 128, 1), max(1, n128 // 2))
    return 128 * tb_units


def critic_kernel(state_ref, act1_ref, w1_ref, r_ref, w2_ref, w3_ref, out_ref):
    s = state_ref[...].astype(jnp.bfloat16)
    a = act1_ref[...].astype(jnp.bfloat16)          # [action | 1]

    # Layer 1: state matmul + tiny routing matmul.  The routing matrix places
    # +action in cols 400..403, -action in cols 404..407, b1 (via the constant
    # 1 lane) in cols 0..399, and a 1 in col 408.  f32 accumulation.
    pre = (jnp.dot(s, w1_ref[...], preferred_element_type=jnp.float32)
           + jnp.dot(a, r_ref[...], preferred_element_type=jnp.float32))

    # Plain ReLU over the whole tile: relu(h1+b1) is wanted for cols < 400;
    # the +/- action split makes relu(a) - relu(-a) == a exact downstream;
    # relu(1) == 1 keeps the bias lane alive; padding cols stay 0.
    x = jnp.maximum(pre, 0.0)

    # Layer 2: one fused (512, 384) matmul.  Row 408 of W2 carries b2 (into
    # cols 0..299) and a 1 into col 383 (the b3 lane).
    h2 = jnp.dot(x.astype(jnp.bfloat16), w2_ref[...],
                 preferred_element_type=jnp.float32)
    h2 = jnp.maximum(h2, 0.0)

    # Output layer: N=1 matmul as VPU multiply + cross-lane reduce.
    # w3 row holds W3 in cols 0..299 and b3 in col 383 (h2[:,383] == 1).
    out = jnp.sum(h2 * w3_ref[...], axis=-1, keepdims=True)
    out_ref[...] = out.astype(out_ref.dtype)


def critic_forward(state, action, kernel_params, *, max_tile=512):
    """state: (B, D_in) f32, action: (B, A) f32 -> (B, 1) f32."""
    w1p, rmat, w2p, w3row = kernel_params
    B, d_in = state.shape
    a_dim = action.shape[1]

    # Only the tiny action gets a wrapper pass (append the constant-1 lane);
    # the state goes to the kernel untouched — no HBM round trip over it.
    act1 = jnp.concatenate(
        [action, jnp.ones((B, 1), action.dtype)], axis=1)

    tb = _choose_tb(B, max_tile)
    bp = _round_up(B, tb)
    if bp != B:
        state = jnp.pad(state, ((0, bp - B), (0, 0)))
        act1 = jnp.pad(act1, ((0, bp - B), (0, 0)))
    grid = (bp // tb,)

    out = pl.pallas_call(
        critic_kernel,
        out_shape=jax.ShapeDtypeStruct((bp, 1), jnp.float32),
        grid=grid,
        in_specs=[
            pl.BlockSpec((tb, d_in), lambda i: (i, 0)),         # state (batch-tiled)
            pl.BlockSpec((tb, a_dim + 1), lambda i: (i, 0)),    # [action | 1]
            pl.BlockSpec((d_in, H1P), lambda i: (0, 0)),        # W1 (VMEM-resident)
            pl.BlockSpec((a_dim + 1, H1P), lambda i: (0, 0)),   # routing + b1
            pl.BlockSpec((H1P, H2P), lambda i: (0, 0)),         # W2 (+b2, +1 lane)
            pl.BlockSpec((1, H2P), lambda i: (0, 0)),           # w3 row (+b3)
        ],
        out_specs=pl.BlockSpec((tb, 1), lambda i: (i, 0)),
        compiler_params=pltpu.CompilerParams(
            dimension_semantics=("parallel",)),
    )(state, act1, w1p, rmat, w2p, w3row)
    return out[:B]


def init_params(key, d_in, a_dim):
    """f32 parameters mirroring the PyTorch module's initialize():
       - input / fc1 weights ~ U(-1/sqrt(out_features), +1/sqrt(out_features))
       - output weight ~ U(-0.003, 0.003)
       - biases keep nn.Linear-style U(-1/sqrt(in_features), +1/sqrt(in_features))."""
    ks = jax.random.split(key, 6)
    lim1 = 1.0 / jnp.sqrt(jnp.float32(H1))
    lim2 = 1.0 / jnp.sqrt(jnp.float32(H2))

    # Stored already transposed: (in_features, out_features)
    w1t = jax.random.uniform(ks[0], (d_in, H1), jnp.float32, -lim1, lim1)
    b1 = jax.random.uniform(ks[1], (1, H1), jnp.float32,
                            -1.0 / jnp.sqrt(jnp.float32(d_in)),
                            1.0 / jnp.sqrt(jnp.float32(d_in)))
    w2t = jax.random.uniform(ks[2], (H1 + a_dim, H2), jnp.float32, -lim2, lim2)
    b2 = jax.random.uniform(ks[3], (1, H2), jnp.float32,
                            -1.0 / jnp.sqrt(jnp.float32(H1 + a_dim)),
                            1.0 / jnp.sqrt(jnp.float32(H1 + a_dim)))
    w3t = jax.random.uniform(ks[4], (H2, 1), jnp.float32, -0.003, 0.003)
    b3 = jax.random.uniform(ks[5], (1, 1), jnp.float32,
                            -1.0 / jnp.sqrt(jnp.float32(H2)),
                            1.0 / jnp.sqrt(jnp.float32(H2)))
    return (w1t, b1, w2t, b2, w3t, b3)


def pack_params(params, d_in, a_dim):
    """Pad/pack logical f32 params into the fused kernel layout.
       MXU operands are cast to bf16 once here; the w3 row stays f32."""
    w1t, b1, w2t, b2, w3t, b3 = params
    assert H1 + 2 * a_dim + 1 <= H1P, (
        "action dim too large for the fused +/- routing layout "
        f"(need 2*a_dim+1 <= {H1P - H1}, got a_dim={a_dim})")
    c1 = H1 + 2 * a_dim            # constant-1 column in layer-1 space (408)
    c2 = H2P - 1                   # constant-1 column in layer-2 space (383)

    # W1: real weights in cols 0..399, zeros elsewhere.
    w1p = jnp.zeros((d_in, H1P), jnp.float32).at[:, :H1].set(w1t)

    # Routing matrix for [action | 1]  (a_dim+1, H1P):
    #   row j  : +1 -> col 400+j,  -1 -> col 404+j   (signed action split)
    #   row A  : b1 -> cols 0..399, 1 -> col 408     (bias lane)
    rmat = jnp.zeros((a_dim + 1, H1P), jnp.float32)
    rmat = rmat.at[jnp.arange(a_dim), H1 + jnp.arange(a_dim)].set(1.0)
    rmat = rmat.at[jnp.arange(a_dim), H1 + a_dim + jnp.arange(a_dim)].set(-1.0)
    rmat = rmat.at[a_dim, :H1].set(b1[0])
    rmat = rmat.at[a_dim, c1].set(1.0)

    # W2: h1 rows, +/- action rows, and the bias lane (row 408).
    w2p = jnp.zeros((H1P, H2P), jnp.float32)
    w2p = w2p.at[:H1, :H2].set(w2t[:H1, :])
    w2p = w2p.at[H1:H1 + a_dim, :H2].set(w2t[H1:, :])                 # +action
    w2p = w2p.at[H1 + a_dim:H1 + 2 * a_dim, :H2].set(-w2t[H1:, :])    # -action
    w2p = w2p.at[c1, :H2].set(b2[0])        # b2 via the constant-1 column
    w2p = w2p.at[c1, c2].set(1.0)           # keeps a 1 alive in h2[:, 383]

    # Output row: W3 in cols 0..299, b3 in col 383 (multiplies the 1 lane).
    w3row = jnp.zeros((1, H2P), jnp.float32).at[:, :H2].set(w3t[:, 0])
    w3row = w3row.at[0, c2].set(b3[0, 0])

    return (w1p.astype(jnp.bfloat16), rmat.astype(jnp.bfloat16),
            w2p.astype(jnp.bfloat16), w3row)


def critic_reference(state, action, params):
    """Pure-JAX f32 reference matching the PyTorch forward."""
    w1t, b1, w2t, b2, w3t, b3 = params
    h1 = jax.nn.relu(state @ w1t + b1)
    x = jnp.concatenate([h1, action], axis=1)
    h2 = jax.nn.relu(x @ w2t + b2)
    return h2 @ w3t + b3


if __name__ == "__main__":
    B, D_IN, A_DIM = 2, 16, 4   # input_shape=16 (state dim), output_shape=4 (action dim)

    key = jax.random.PRNGKey(0)
    kp, ks, ka = jax.random.split(key, 3)

    params = init_params(kp, D_IN, A_DIM)          # f32, PyTorch-equivalent
    kparams = pack_params(params, D_IN, A_DIM)     # padded / bf16 kernel layout

    state = jax.random.normal(ks, (B, D_IN), jnp.float32)
    action = jax.random.normal(ka, (B, A_DIM), jnp.float32)

    out = critic_forward(state, action, kparams)
    out = jax.block_until_ready(out)

    ref = critic_reference(state, action, params)
    assert out.shape == (B, 1)
    # bf16 MXU operands (incl. bf16-folded b1/b2) vs full-f32 reference: the
    # final-layer weights are tiny (+-0.003) so absolute deviation is ~1e-5;
    # 2e-3 is a wide safety margin.  b3 stays exact f32.
    assert jnp.allclose(out, ref, atol=2e-3, rtol=2e-3), (out, ref)

    print("KERNEL_OK")
</pallas_src>

<mosaic_0001>
module attributes {stable_mosaic.version = 11 : i64} {
  func.func @critic_kernel(%arg0: i32, %arg1: memref<8x16xf32, #tpu.memory_space<vmem>>, %arg2: memref<8x5xf32, #tpu.memory_space<vmem>>, %arg3: memref<16x512xbf16, #tpu.memory_space<vmem>>, %arg4: memref<5x512xbf16, #tpu.memory_space<vmem>>, %arg5: memref<512x384xbf16, #tpu.memory_space<vmem>>, %arg6: memref<1x384xf32, #tpu.memory_space<vmem>>, %arg7: memref<8x1xf32, #tpu.memory_space<vmem>>) attributes {dimension_semantics = [#tpu.dimension_semantics<parallel>], iteration_bounds = array<i64: 1>, scalar_prefetch = 0 : i64, scratch_operands = 0 : i64, tpu.core_type = #tpu.core_type<tc>, window_params = [{transform_indices = @transform_0, window_bounds = array<i64: 8, 16>}, {transform_indices = @transform_1, window_bounds = array<i64: 8, 5>}, {pipeline_mode = #tpu.pipeline_mode<synchronous>, transform_indices = @transform_2, window_bounds = array<i64: 16, 512>}, {pipeline_mode = #tpu.pipeline_mode<synchronous>, transform_indices = @transform_3, window_bounds = array<i64: 5, 512>}, {pipeline_mode = #tpu.pipeline_mode<synchronous>, transform_indices = @transform_4, window_bounds = array<i64: 512, 384>}, {pipeline_mode = #tpu.pipeline_mode<synchronous>, transform_indices = @transform_5, window_bounds = array<i64: 1, 384>}, {transform_indices = @transform_6, window_bounds = array<i64: 8, 1>}]} {
    %c0 = arith.constant 0 : index
    %c0_0 = arith.constant 0 : index
    %0 = vector.load %arg1[%c0, %c0_0] : memref<8x16xf32, #tpu.memory_space<vmem>>, vector<8x16xf32>
    %1 = arith.truncf %0 : vector<8x16xf32> to vector<8x16xbf16>
    %c0_1 = arith.constant 0 : index
    %c0_2 = arith.constant 0 : index
    %2 = vector.load %arg2[%c0_1, %c0_2] : memref<8x5xf32, #tpu.memory_space<vmem>>, vector<8x5xf32>
    %3 = arith.truncf %2 : vector<8x5xf32> to vector<8x5xbf16>
    %c0_3 = arith.constant 0 : index
    %c0_4 = arith.constant 0 : index
    %4 = vector.load %arg3[%c0_3, %c0_4] : memref<16x512xbf16, #tpu.memory_space<vmem>>, vector<16x512xbf16>
    %cst = arith.constant dense<0.000000e+00> : vector<8x512xf32>
    %5 = tpu.matmul %1, %4, %cst {dimension_numbers = #tpu.dot_dimension_numbers<[1], [0], [0], [1], [0, 0, 1, 1], [], []>} : vector<8x16xbf16>, vector<16x512xbf16>, vector<8x512xf32> -> vector<8x512xf32>
    %c0_5 = arith.constant 0 : index
    %c0_6 = arith.constant 0 : index
    %6 = vector.load %arg4[%c0_5, %c0_6] : memref<5x512xbf16, #tpu.memory_space<vmem>>, vector<5x512xbf16>
    %cst_7 = arith.constant dense<0.000000e+00> : vector<8x512xf32>
    %7 = tpu.matmul %3, %6, %cst_7 {dimension_numbers = #tpu.dot_dimension_numbers<[1], [0], [0], [1], [0, 0, 1, 1], [], []>} : vector<8x5xbf16>, vector<5x512xbf16>, vector<8x512xf32> -> vector<8x512xf32>
    %8 = arith.addf %5, %7 : vector<8x512xf32>
    %cst_8 = arith.constant 0.000000e+00 : f32
    %9 = vector.broadcast %cst_8 : f32 to vector<8x512xf32>
    %10 = arith.maximumf %8, %9 : vector<8x512xf32>
    %11 = arith.truncf %10 : vector<8x512xf32> to vector<8x512xbf16>
    %c0_9 = arith.constant 0 : index
    %c0_10 = arith.constant 0 : index
    %12 = vector.load %arg5[%c0_9, %c0_10] : memref<512x384xbf16, #tpu.memory_space<vmem>>, vector<512x384xbf16>
    %cst_11 = arith.constant dense<0.000000e+00> : vector<8x384xf32>
    %13 = tpu.matmul %11, %12, %cst_11 {dimension_numbers = #tpu.dot_dimension_numbers<[1], [0], [0], [1], [0, 0, 1, 1], [], []>} : vector<8x512xbf16>, vector<512x384xbf16>, vector<8x384xf32> -> vector<8x384xf32>
    %cst_12 = arith.constant 0.000000e+00 : f32
    %14 = vector.broadcast %cst_12 : f32 to vector<8x384xf32>
    %15 = arith.maximumf %13, %14 : vector<8x384xf32>
    %c0_13 = arith.constant 0 : index
    %c0_14 = arith.constant 0 : index
    %16 = vector.load %arg6[%c0_13, %c0_14] : memref<1x384xf32, #tpu.memory_space<vmem>>, vector<1x384xf32>
    %17 = vector.broadcast %16 : vector<1x384xf32> to vector<8x384xf32>
    %18 = arith.mulf %15, %17 : vector<8x384xf32>
    %cst_15 = arith.constant dense<0.000000e+00> : vector<8xf32>
    %19 = vector.multi_reduction <add>, %18, %cst_15 [1] : vector<8x384xf32> to vector<8xf32>
    %20 = vector.shape_cast %19 : vector<8xf32> to vector<8x1xf32>
    %c0_16 = arith.constant 0 : index
    %c0_17 = arith.constant 0 : index
    %21 = vector.load %arg7[%c0_16, %c0_17] : memref<8x1xf32, #tpu.memory_space<vmem>>, vector<8x1xf32>
    tpu.vector_store %arg7[%c0_16, %c0_17], %20 {strides = array<i32>} : memref<8x1xf32, #tpu.memory_space<vmem>>, vector<8x1xf32>,
    return
  }
  func.func @transform_0(%arg0: i32) -> (i32, i32) {
    %c0_i32 = arith.constant 0 : i32
    %c0_i32_0 = arith.constant 0 : i32
    return %arg0, %c0_i32 : i32, i32
  }
  func.func @transform_1(%arg0: i32) -> (i32, i32) {
    %c0_i32 = arith.constant 0 : i32
    %c0_i32_0 = arith.constant 0 : i32
    return %arg0, %c0_i32 : i32, i32
  }
  func.func @transform_2(%arg0: i32) -> (i32, i32) {
    %c0_i32 = arith.constant 0 : i32
    %c0_i32_0 = arith.constant 0 : i32
    %c0_i32_1 = arith.constant 0 : i32
    return %c0_i32, %c0_i32_0 : i32, i32
  }
  func.func @transform_3(%arg0: i32) -> (i32, i32) {
    %c0_i32 = arith.constant 0 : i32
    %c0_i32_0 = arith.constant 0 : i32
    %c0_i32_1 = arith.constant 0 : i32
    return %c0_i32, %c0_i32_0 : i32, i32
  }
  func.func @transform_4(%arg0: i32) -> (i32, i32) {
    %c0_i32 = arith.constant 0 : i32
    %c0_i32_0 = arith.constant 0 : i32
    %c0_i32_1 = arith.constant 0 : i32
    return %c0_i32, %c0_i32_0 : i32, i32
  }
  func.func @transform_5(%arg0: i32) -> (i32, i32) {
    %c0_i32 = arith.constant 0 : i32
    %c0_i32_0 = arith.constant 0 : i32
    %c0_i32_1 = arith.constant 0 : i32
    return %c0_i32, %c0_i32_0 : i32, i32
  }
  func.func @transform_6(%arg0: i32) -> (i32, i32) {
    %c0_i32 = arith.constant 0 : i32
    %c0_i32_0 = arith.constant 0 : i32
    return %arg0, %c0_i32 : i32, i32
  }
}

</mosaic_0001>

<bundles_post_ra>
// kernel: tpu_custom_call.1
= control target key start
LH: loop header
LB: loop body
LE: loop exit
PB: predicated region body
PF: predicated region fallthrough
CT: control target
= control target key end

     0   :  { %11 = vsyncpa [#allocation3], 0  ;;  %s1642_s0 = inlined_call_operand.hbm [shape: f32[8,16], index: 0, kind: input, shape index: {}]   ;;  %s1643_s1 = inlined_call_operand.hbm [shape: f32[8,5], index: 1, kind: input, shape index: {}]   ;;  %s1644_s2 = inlined_call_operand.hbm [shape: bf16[16,512], index: 2, kind: input, shape index: {}]   ;;  %s1645_s3 = inlined_call_operand.hbm [shape: bf16[5,512], index: 3, kind: input, shape index: {}]   ;;  %s1646_s4 = inlined_call_operand.hbm [shape: bf16[512,384], index: 4, kind: input, shape index: {}]   ;;  %s1647_s5 = inlined_call_operand.vmem [shape: f32[1,384], index: 5, kind: input, shape index: {}]   ;;  %s1648_s6 = inlined_call_operand.vmem [shape: f32[8,1], index: 6, kind: output, shape index: {}]  }
   0x1   :  { %12 = vsyncpa [#allocation5], 0 }
   0x2   :  { %13 = vsyncpa [#allocation8], 0  ;;  %s1567_s21 = smov [#allocation4]   ;;  %s1568_s23 = smov [#allocation7]  }
   0x3   :  { %s30_s22 = sshll.u32 %s1567_s21, 4  ;;  %s52_s24 = sshll.u32 %s1568_s23, 4  ;;  %s31_s22 = int_to_ptr.vmem [resolvable:$true] %s30_s22  ;;  %s53_s24 = int_to_ptr.vmem [resolvable:$true] %s52_s24 }
   0x4   :  { %s1469_s25 = scalar_lea.vmem %s31_s22, 128  ;;  %p1474_p1 = scmp.lt.s32.totalorder %s31_s22, %s31_s22 }
   0x5   :  { %p1470_p0 = scmp.ne.s32.totalorder %s31_s22, %s1469_s25  ;;  %p1475_p2 = scmp.lt.s32.totalorder %s1469_s25, %s1469_s25 }
   0x7   :  { %p1476_p3 = por %p1475_p2, %p1474_p1 }
   0x9   :  { %p1477_p4 = pnand %p1476_p3, %p1470_p0 }
   0xb   :  { %1480 = shalt.err (!%p1477_p4)
}
   0xc   :  { %33 = dma.hbm_to_vmem [thread:$0]  %s1643_s1, 128, %s31_s22, [#allocation5]  }
   0xd   :  { %s1489_s28 = scalar_lea.vmem %s53_s24, 256  ;;  %p1494_p6 = scmp.lt.s32.totalorder %s53_s24, %s53_s24 }
   0xe   :  { %p1490_p5 = scmp.ne.s32.totalorder %s53_s24, %s1489_s28  ;;  %p1495_p7 = scmp.lt.s32.totalorder %s1489_s28, %s1489_s28 }
  0x10   :  { %p1496_p8 = por %p1495_p7, %p1494_p6 }
  0x12   :  { %p1497_p9 = pnand %p1496_p8, %p1490_p5 }
  0x14   :  { %1500 = shalt.err (!%p1497_p9)
}
  0x15   :  { %55 = dma.hbm_to_vmem [thread:$0]  %s1645_s3, 256, %s53_s24, [#allocation8]  }
  0x16   :  { %s1569_s7 = smov [#allocation2]   ;;  %s1570_s9 = smov [#allocation6]  }
  0x17   :  { %s20_s8 = sshll.u32 %s1569_s7, 4  ;;  %s39_s10 = sshll.u32 %s1570_s9, 4  ;;  %s21_s8 = int_to_ptr.vmem [resolvable:$true] %s20_s8  ;;  %s40_s10 = int_to_ptr.vmem [resolvable:$true] %s39_s10 }
  0x18   :  { %s1509_s11 = scalar_lea.vmem %s21_s8, 128  ;;  %p1514_p11 = scmp.lt.s32.totalorder %s21_s8, %s21_s8 }
  0x19   :  { %p1510_p10 = scmp.ne.s32.totalorder %s21_s8, %s1509_s11  ;;  %p1515_p12 = scmp.lt.s32.totalorder %s1509_s11, %s1509_s11 }
  0x1b   :  { %p1516_p13 = por %p1515_p12, %p1514_p11 }
  0x1d   :  { %p1517_p0 = pnand %p1516_p13, %p1510_p10 }
  0x1f   :  { %1520 = shalt.err (!%p1517_p0)
}
  0x20   :  { %23 = dma.hbm_to_vmem [thread:$0]  %s1642_s0, 128, %s21_s8, [#allocation3]  }
  0x21   :  { %s1529_s13 = scalar_lea.vmem %s40_s10, 512  ;;  %p1534_p2 = scmp.lt.s32.totalorder %s40_s10, %s40_s10 }
  0x22   :  { %p1530_p1 = scmp.ne.s32.totalorder %s40_s10, %s1529_s13  ;;  %p1535_p3 = scmp.lt.s32.totalorder %s1529_s13, %s1529_s13 }
  0x24   :  { %p1536_p4 = por %p1535_p3, %p1534_p2 }
  0x26   :  { %p1537_p5 = pnand %p1536_p4, %p1530_p1 }
  0x28   :  { %1540 = shalt.err (!%p1537_p5)
}
  0x29   :  { %s1571_s3 = smov 256   ;;  %s1572_s14 = smov 16  }
  0x2a   :  { %45 = dma.hbm_to_vmem [thread:$0]  %s1644_s2, 512, %s40_s10, [#allocation5], %s1571_s3, %s1571_s3, %s1572_s14  }
  0x2b   :  { %s1573_s17 = smov [#allocation9]  }
  0x2c   :  { %s61_s18 = sshll.u32 %s1573_s17, 4  ;;  %s62_s18 = int_to_ptr.vmem [resolvable:$true] %s61_s18 }
  0x2d   :  { %s1549_s19 = scalar_lea.vmem %s62_s18, 12288  ;;  %p1554_p7 = scmp.lt.s32.totalorder %s62_s18, %s62_s18 }
  0x2e   :  { %p1550_p6 = scmp.ne.s32.totalorder %s62_s18, %s1549_s19  ;;  %p1555_p8 = scmp.lt.s32.totalorder %s1549_s19, %s1549_s19 }
  0x30   :  { %p1556_p9 = por %p1555_p8, %p1554_p7 }
  0x32   :  { %p1557_p10 = pnand %p1556_p9, %p1550_p6 }
  0x34   :  { %1560 = shalt.err (!%p1557_p10)
}
  0x35   :  { %s1574_s0 = smov 192   ;;  %s1575_s20 = smov 12  }
  0x36   :  { %67 = dma.hbm_to_vmem [thread:$0]  %s1646_s4, 12288, %s62_s18, [#allocation8], %s1574_s0, %s1574_s0, %s1575_s20  }
  0x37   :  { %1561 = dma.done.wait [#allocation3], 128  }
  0x38   :  { %1562 = vsyncadd [#allocation3], 4294967168 }
  0x39   :  { %1563 = dma.done.wait [#allocation5], 640  }
  0x3a   :  { %1564 = vsyncadd [#allocation5], 4294966656 }
  0x3b   :  { %1565 = dma.done.wait [#allocation8], 12544  }
  0x3c   :  { %1566 = vsyncadd [#allocation8], 4294954752  ;;  %vm110_vm0 = vcmask 1041408   ;;  %v1576_v0 = vmov 0   ;;  %vm111_vm1 = vcmask 1042432   ;;  %v1577_v1 = vmov 65535  }
  0x3d   :  { %158 = vmatprep.mubr.bf16.mxu0 %v1576_v0  ;;  %199 = vmatprep.mubr.bf16.mxu1 %v1576_v0  ;;  %v112_v2 = vsel %vm110_vm0, 4294967295, %v1577_v1  ;;  %v94_v3 = vld [vmem:[#allocation7] sm:$0x77]  ;;  %v95_v5 = vld [vmem:[#allocation7 + $0x8] sm:$0x77]  ;;  %v88_v10 = vld [vmem:[#allocation4] sm:$0xff] }
  0x3e   :  { %v113_v4 = vsel %vm111_vm1, %v112_v2, 0  ;;  %v1161_v6 = vcombine.high %v94_v3, %v94_v3  ;;  %v1163_v7 = vcombine.high %v95_v5, %v95_v5  ;;  %v1160_v8 = vcombine.low %v94_v3, %v94_v3  ;;  %v1329_v15 = vld [vmem:[#allocation6 + $0x4] ss:$16 sps:$4 sm:$0xff]   ;;  %v1332_v16 = vld [vmem:[#allocation6 + $0xc] ss:$16 sps:$4 sm:$0xff]  }
  0x3f   :  { %v1162_v9 = vcombine.low %v95_v5, %v95_v5  ;;  %v89_v17 = vpack.c.bf16 %v88_v10, %v88_v10  ;;  %vm106_vm2 = vcmask 39936   ;;  %v1327_v18 = vld [vmem:[#allocation6] ss:$16 sps:$4 sm:$0xff]   ;;  %v1330_v19 = vld [vmem:[#allocation6 + $0x8] ss:$16 sps:$4 sm:$0xff]   ;;  %vm228_vm3 = vcmask 130048  }
  0x40   :  { %v118_v11 = vand.u32 %v1161_v6, %v113_v4  ;;  %v124_v12 = vand.u32 %v1163_v7, %v113_v4  ;;  %v115_v13 = vand.u32 %v1160_v8, %v113_v4  ;;  %v1335_v20 = vld [vmem:[#allocation9 + $0xac] ss:$12 sps:$4 sm:$0xff]   ;;  %v86_v22 = vld [vmem:[#allocation2] sm:$0xff]  ;;  %v1333_v24 = vld [vmem:[#allocation9 + $0xa8] ss:$12 sps:$4 sm:$0xff]   ;;  %vm1151_vm4 = vcmask 7168  }
  0x41   :  { %v121_v14 = vand.u32 %v1162_v9, %v113_v4  ;;  %v1338_v21 = vld [vmem:[#allocation9 + $0x22c] ss:$12 sps:$4 sm:$0xff]   ;;  %v87_v23 = vpack.c.bf16 %v86_v22, %v86_v22  ;;  %v1336_v25 = vld [vmem:[#allocation9 + $0x228] ss:$12 sps:$4 sm:$0xff]   ;;  %v1339_v28 = vld [vmem:[#allocation9 + $0x90] ss:$12 sps:$4 sm:$0xff]  }
  0x42   :  { %140 = vmatprep.subr.bf16.mxu0 %v118_v11  ;;  %181 = vmatprep.subr.bf16.mxu1 %v124_v12  ;;  %v1341_v26 = vld [vmem:[#allocation9 + $0x94] ss:$12 sps:$4 sm:$0xff]   ;;  %v1342_v29 = vld [vmem:[#allocation9 + $0x210] ss:$12 sps:$4 sm:$0xff]   ;;  %v1345_v32 = vld [vmem:[#allocation9 + $0x78] ss:$12 sps:$4 sm:$0xff]  }
  0x43   :  { %141 = vmatpush1.bf16.msra.mxu0 %v115_v13  ;;  %182 = vmatpush1.bf16.msra.mxu1 %v121_v14  ;;  %v1344_v27 = vld [vmem:[#allocation9 + $0x214] ss:$12 sps:$4 sm:$0xff]   ;;  %v1347_v30 = vld [vmem:[#allocation9 + $0x7c] ss:$12 sps:$4 sm:$0xff]   ;;  %v1348_v33 = vld [vmem:[#allocation9 + $0x1f8] ss:$12 sps:$4 sm:$0xff]  }
  0x44   :  { %246 = vmatprep.subr.bf16.mxu0 %v1329_v15  ;;  %287 = vmatprep.subr.bf16.mxu1 %v1332_v16  ;;  %v1350_v31 = vld [vmem:[#allocation9 + $0x1fc] ss:$12 sps:$4 sm:$0xff]   ;;  %v1353_v34 = vld [vmem:[#allocation9 + $0x64] ss:$12 sps:$4 sm:$0xff]   ;;  %v1351_v36 = vld [vmem:[#allocation9 + $0x60] ss:$12 sps:$4 sm:$0xff]  }
  0x45   :  { %v1356_v35 = vld [vmem:[#allocation9 + $0x1e4] ss:$12 sps:$4 sm:$0xff]   ;;  %v1354_v37 = vld [vmem:[#allocation9 + $0x1e0] ss:$12 sps:$4 sm:$0xff]   ;;  %v1357_v40 = vld [vmem:[#allocation9 + $0x48] ss:$12 sps:$4 sm:$0xff]  }
  0x46   :  { %1164 = vmatmul.mubr.msk.bf16.vlgmr.msra.gmra.mxu0 %vm106_vm2, %v89_v17  ;;  %1165 = vmatmul.mubr.msk.bf16.vlgmr.msra.gmra.mxu1 %vm106_vm2, %v89_v17  ;;  %v1359_v38 = vld [vmem:[#allocation9 + $0x4c] ss:$12 sps:$4 sm:$0xff]   ;;  %v1360_v41 = vld [vmem:[#allocation9 + $0x1c8] ss:$12 sps:$4 sm:$0xff]   ;;  %v1363_v44 = vld [vmem:[#allocation9 + $0x30] ss:$12 sps:$4 sm:$0xff]  }
  0x47   :  { %247 = vmatpush1.bf16.msra.mxu0 %v1327_v18  ;;  %288 = vmatpush1.bf16.msra.mxu1 %v1330_v19  ;;  %v1362_v39 = vld [vmem:[#allocation9 + $0x1cc] ss:$12 sps:$4 sm:$0xff]   ;;  %v1365_v42 = vld [vmem:[#allocation9 + $0x34] ss:$12 sps:$4 sm:$0xff]   ;;  %v1366_v45 = vld [vmem:[#allocation9 + $0x1b0] ss:$12 sps:$4 sm:$0xff]  }
  0x48   :  { %264 = vmatprep.mubr.bf16.mxu0 %v1576_v0  ;;  %305 = vmatprep.mubr.bf16.mxu1 %v1576_v0  ;;  %v1368_v43 = vld [vmem:[#allocation9 + $0x1b4] ss:$12 sps:$4 sm:$0xff]   ;;  %v1371_v46 = vld [vmem:[#allocation9 + $0x1c] ss:$12 sps:$4 sm:$0xff]   ;;  %v1369_v48 = vld [vmem:[#allocation9 + $0x18] ss:$12 sps:$4 sm:$0xff]  }
  0x49   :  { %962 = vmatprep.subr.bf16.mxu0 %v1335_v20  ;;  %1003 = vmatprep.subr.bf16.mxu1 %v1338_v21  ;;  %v1374_v47 = vld [vmem:[#allocation9 + $0x19c] ss:$12 sps:$4 sm:$0xff]   ;;  %v1372_v49 = vld [vmem:[#allocation9 + $0x198] ss:$12 sps:$4 sm:$0xff]   ;;  %v1375_v52 = vld [vmem:[#allocation9] ss:$12 sps:$4 sm:$0xff]  }
  0x4a   :  { %v1377_v50 = vld [vmem:[#allocation9 + $0x4] ss:$12 sps:$4 sm:$0xff]   ;;  %v1378_v53 = vld [vmem:[#allocation9 + $0x180] ss:$12 sps:$4 sm:$0xff]   ;;  %v1381_v56 = vld [vmem:[#allocation9 + $0x168] ss:$12 sps:$4 sm:$0xff]  }
  0x4b   :  { %v1380_v51 = vld [vmem:[#allocation9 + $0x184] ss:$12 sps:$4 sm:$0xff]   ;;  %v1383_v54 = vld [vmem:[#allocation9 + $0x16c] ss:$12 sps:$4 sm:$0xff]   ;;  %v1384_v57 = vld [vmem:[#allocation9 + $0x2e8] ss:$12 sps:$4 sm:$0xff]  }
  0x4c   :  { %v1386_v55 = vld [vmem:[#allocation9 + $0x2ec] ss:$12 sps:$4 sm:$0xff]   ;;  %v1389_v58 = vld [vmem:[#allocation9 + $0x154] ss:$12 sps:$4 sm:$0xff]   ;;  %v1387_v60 = vld [vmem:[#allocation9 + $0x150] ss:$12 sps:$4 sm:$0xff]  }
  0x4d   :  { %v1392_v59 = vld [vmem:[#allocation9 + $0x2d4] ss:$12 sps:$4 sm:$0xff]   ;;  %v1390_v61 = vld [vmem:[#allocation9 + $0x2d0] ss:$12 sps:$4 sm:$0xff]   ;;  %v1393_v0 = vld [vmem:[#allocation9 + $0x138] ss:$12 sps:$4 sm:$0xff]  }
  0x4e   :  { %1170 = vmatmul.mubr.msk.bf16.vlgmr.msra.gmra.mxu0 %vm228_vm3, %v87_v23  ;;  %1171 = vmatmul.mubr.msk.bf16.vlgmr.msra.gmra.mxu1 %vm228_vm3, %v87_v23  ;;  %v1395_v62 = vld [vmem:[#allocation9 + $0x13c] ss:$12 sps:$4 sm:$0xff]   ;;  %v1396_v1 = vld [vmem:[#allocation9 + $0x2b8] ss:$12 sps:$4 sm:$0xff]   ;;  %v1399_v4 = vld [vmem:[#allocation9 + $0x120] ss:$12 sps:$4 sm:$0xff]  }
  0x4f   :  { %963 = vmatpush1.bf16.msra.mxu0 %v1333_v24  ;;  %1004 = vmatpush1.bf16.msra.mxu1 %v1336_v25  ;;  %v1398_v63 = vld [vmem:[#allocation9 + $0x2bc] ss:$12 sps:$4 sm:$0xff]   ;;  %v1401_v2 = vld [vmem:[#allocation9 + $0x124] ss:$12 sps:$4 sm:$0xff]   ;;  %v1402_v5 = vld [vmem:[#allocation9 + $0x2a0] ss:$12 sps:$4 sm:$0xff]  }
  0x50   :  { %964 = vmatprep.subr.bf16.mxu0 %v1341_v26  ;;  %1005 = vmatprep.subr.bf16.mxu1 %v1344_v27  ;;  %v1404_v3 = vld [vmem:[#allocation9 + $0x2a4] ss:$12 sps:$4 sm:$0xff]   ;;  %v1407_v6 = vld [vmem:[#allocation9 + $0x10c] ss:$12 sps:$4 sm:$0xff]   ;;  %v1405_v8 = vld [vmem:[#allocation9 + $0x108] ss:$12 sps:$4 sm:$0xff]  }
  0x51   :  { %v1410_v7 = vld [vmem:[#allocation9 + $0x28c] ss:$12 sps:$4 sm:$0xff]   ;;  %v1408_v9 = vld [vmem:[#allocation9 + $0x288] ss:$12 sps:$4 sm:$0xff]   ;;  %v1411_v12 = vld [vmem:[#allocation9 + $0xf0] ss:$12 sps:$4 sm:$0xff]  }
  0x52   :  { %v1413_v10 = vld [vmem:[#allocation9 + $0xf4] ss:$12 sps:$4 sm:$0xff]   ;;  %v1414_v13 = vld [vmem:[#allocation9 + $0x270] ss:$12 sps:$4 sm:$0xff]   ;;  %v1417_v16 = vld [vmem:[#allocation9 + $0xd8] ss:$12 sps:$4 sm:$0xff]  }
  0x53   :  { %965 = vmatpush1.bf16.msra.mxu0 %v1339_v28  ;;  %1006 = vmatpush1.bf16.msra.mxu1 %v1342_v29  ;;  %v1416_v11 = vld [vmem:[#allocation9 + $0x274] ss:$12 sps:$4 sm:$0xff]   ;;  %v1419_v14 = vld [vmem:[#allocation9 + $0xdc] ss:$12 sps:$4 sm:$0xff]   ;;  %v1420_v17 = vld [vmem:[#allocation9 + $0x258] ss:$12 sps:$4 sm:$0xff]  }
  0x54   :  { %966 = vmatprep.subr.bf16.mxu0 %v1347_v30  ;;  %1007 = vmatprep.subr.bf16.mxu1 %v1350_v31  ;;  %v1422_v15 = vld [vmem:[#allocation9 + $0x25c] ss:$12 sps:$4 sm:$0xff]   ;;  %v1425_v18 = vld [vmem:[#allocation9 + $0xc4] ss:$12 sps:$4 sm:$0xff]   ;;  %v1423_v20 = vld [vmem:[#allocation9 + $0xc0] ss:$12 sps:$4 sm:$0xff]  }
  0x55   :  { %v1428_v19 = vld [vmem:[#allocation9 + $0x244] ss:$12 sps:$4 sm:$0xff]   ;;  %v1426_v21 = vld [vmem:[#allocation9 + $0x240] ss:$12 sps:$4 sm:$0xff]  }
  0x56   :  { %v1429_v22 = vld [vmem:[#allocation9 + $0x170] ss:$12 sps:$4 sm:$0xff]  }
  0x57   :  { %967 = vmatpush1.bf16.msra.mxu0 %v1345_v32  ;;  %1008 = vmatpush1.bf16.msra.mxu1 %v1348_v33  ;;  %v1430_v23 = vld [vmem:[#allocation9 + $0x2f0] ss:$12 sps:$4 sm:$0xff]  }
  0x58   :  { %968 = vmatprep.subr.bf16.mxu0 %v1353_v34  ;;  %1009 = vmatprep.subr.bf16.mxu1 %v1356_v35 }
  0x5b   :  { %969 = vmatpush1.bf16.msra.mxu0 %v1351_v36  ;;  %1010 = vmatpush1.bf16.msra.mxu1 %v1354_v37 }
  0x5c   :  { %970 = vmatprep.subr.bf16.mxu0 %v1359_v38  ;;  %1011 = vmatprep.subr.bf16.mxu1 %v1362_v39 }
  0x5f   :  { %971 = vmatpush1.bf16.msra.mxu0 %v1357_v40  ;;  %1012 = vmatpush1.bf16.msra.mxu1 %v1360_v41 }
  0x60   :  { %972 = vmatprep.subr.bf16.mxu0 %v1365_v42  ;;  %1013 = vmatprep.subr.bf16.mxu1 %v1368_v43 }
  0x63   :  { %973 = vmatpush1.bf16.msra.mxu0 %v1363_v44  ;;  %1014 = vmatpush1.bf16.msra.mxu1 %v1366_v45 }
  0x64   :  { %974 = vmatprep.subr.bf16.mxu0 %v1371_v46  ;;  %1015 = vmatprep.subr.bf16.mxu1 %v1374_v47 }
  0x67   :  { %975 = vmatpush1.bf16.msra.mxu0 %v1369_v48  ;;  %1016 = vmatpush1.bf16.msra.mxu1 %v1372_v49 }
  0x68   :  { %976 = vmatprep.subr.bf16.mxu0 %v1377_v50  ;;  %1017 = vmatprep.subr.bf16.mxu1 %v1380_v51  ;;  %v1431_v50 = vld [vmem:[#allocation9 + $0xb0] ss:$12 sps:$4 sm:$0xff]  }
  0x69   :  { %v1432_v51 = vld [vmem:[#allocation9 + $0x230] ss:$12 sps:$4 sm:$0xff]  }
  0x6b   :  { %977 = vmatpush1.bf16.msra.mxu0 %v1375_v52  ;;  %1018 = vmatpush1.bf16.msra.mxu1 %v1378_v53 }
  0x6c   :  { %978 = vmatprep.subr.bf16.mxu0 %v1383_v54  ;;  %1019 = vmatprep.subr.bf16.mxu1 %v1386_v55  ;;  %v1433_v54 = vld [vmem:[#allocation9 + $0x158] ss:$12 sps:$4 sm:$0xff]  }
  0x6d   :  { %v1434_v55 = vld [vmem:[#allocation9 + $0x2d8] ss:$12 sps:$4 sm:$0xff]  }
  0x6f   :  { %979 = vmatpush2.bf16.msra.mxu0 %v1381_v56  ;;  %1020 = vmatpush2.bf16.msra.mxu1 %v1384_v57  ;;  %v1435_v56 = vld [vmem:[#allocation9 + $0x98] ss:$12 sps:$4 sm:$0xff]  }
  0x70   :  { %980 = vmatprep.subr.bf16.mxu0 %v1389_v58  ;;  %1021 = vmatprep.subr.bf16.mxu1 %v1392_v59  ;;  %v1436_v57 = vld [vmem:[#allocation9 + $0x218] ss:$12 sps:$4 sm:$0xff]   ;;  %v1437_v58 = vld [vmem:[#allocation9 + $0x140] ss:$12 sps:$4 sm:$0xff]  }
  0x71   :  { %v1438_v59 = vld [vmem:[#allocation9 + $0x2c0] ss:$12 sps:$4 sm:$0xff]  }
  0x73   :  { %981 = vmatpush2.bf16.msra.mxu0 %v1387_v60  ;;  %1022 = vmatpush2.bf16.msra.mxu1 %v1390_v61  ;;  %v1439_v60 = vld [vmem:[#allocation9 + $0x80] ss:$12 sps:$4 sm:$0xff]  }
  0x74   :  { %982 = vmatprep.subr.bf16.mxu0 %v1395_v62  ;;  %1023 = vmatprep.subr.bf16.mxu1 %v1398_v63  ;;  %v1440_v61 = vld [vmem:[#allocation9 + $0x200] ss:$12 sps:$4 sm:$0xff]   ;;  %v1441_v62 = vld [vmem:[#allocation9 + $0x128] ss:$12 sps:$4 sm:$0xff]  }
  0x75   :  { %v1442_v63 = vld [vmem:[#allocation9 + $0x2a8] ss:$12 sps:$4 sm:$0xff]  }
  0x77   :  { %983 = vmatpush2.bf16.msra.mxu0 %v1393_v0  ;;  %1024 = vmatpush2.bf16.msra.mxu1 %v1396_v1  ;;  %v1443_v0 = vld [vmem:[#allocation9 + $0x68] ss:$12 sps:$4 sm:$0xff]  }
  0x78   :  { %984 = vmatprep.subr.bf16.mxu0 %v1401_v2  ;;  %1025 = vmatprep.subr.bf16.mxu1 %v1404_v3  ;;  %v1444_v1 = vld [vmem:[#allocation9 + $0x1e8] ss:$12 sps:$4 sm:$0xff]   ;;  %v1445_v2 = vld [vmem:[#allocation9 + $0x110] ss:$12 sps:$4 sm:$0xff]  }
  0x79   :  { %v1446_v3 = vld [vmem:[#allocation9 + $0x290] ss:$12 sps:$4 sm:$0xff]  }
  0x7b   :  { %985 = vmatpush2.bf16.msra.mxu0 %v1399_v4  ;;  %1026 = vmatpush2.bf16.msra.mxu1 %v1402_v5  ;;  %v1447_v4 = vld [vmem:[#allocation9 + $0x50] ss:$12 sps:$4 sm:$0xff]  }
  0x7c   :  { %986 = vmatprep.subr.bf16.mxu0 %v1407_v6  ;;  %1027 = vmatprep.subr.bf16.mxu1 %v1410_v7  ;;  %v1448_v5 = vld [vmem:[#allocation9 + $0x1d0] ss:$12 sps:$4 sm:$0xff]   ;;  %v1449_v6 = vld [vmem:[#allocation9 + $0xf8] ss:$12 sps:$4 sm:$0xff]  }
  0x7d   :  { %v1450_v7 = vld [vmem:[#allocation9 + $0x278] ss:$12 sps:$4 sm:$0xff]  }
  0x7f   :  { %987 = vmatpush2.bf16.msra.mxu0 %v1405_v8  ;;  %1028 = vmatpush2.bf16.msra.mxu1 %v1408_v9  ;;  %v1451_v8 = vld [vmem:[#allocation9 + $0x38] ss:$12 sps:$4 sm:$0xff]  }
  0x80   :  { %988 = vmatprep.subr.bf16.mxu0 %v1413_v10  ;;  %1029 = vmatprep.subr.bf16.mxu1 %v1416_v11  ;;  %v1452_v9 = vld [vmem:[#allocation9 + $0x1b8] ss:$12 sps:$4 sm:$0xff]   ;;  %v1453_v10 = vld [vmem:[#allocation9 + $0xe0] ss:$12 sps:$4 sm:$0xff]  }
  0x81   :  { %v1454_v11 = vld [vmem:[#allocation9 + $0x260] ss:$12 sps:$4 sm:$0xff]  }
  0x83   :  { %989 = vmatpush2.bf16.msra.mxu0 %v1411_v12  ;;  %1030 = vmatpush2.bf16.msra.mxu1 %v1414_v13  ;;  %v1455_v12 = vld [vmem:[#allocation9 + $0x20] ss:$12 sps:$4 sm:$0xff]  }
  0x84   :  { %990 = vmatprep.subr.bf16.mxu0 %v1419_v14  ;;  %1031 = vmatprep.subr.bf16.mxu1 %v1422_v15  ;;  %v1456_v13 = vld [vmem:[#allocation9 + $0x1a0] ss:$12 sps:$4 sm:$0xff]   ;;  %v1457_v14 = vld [vmem:[#allocation9 + $0xc8] ss:$12 sps:$4 sm:$0xff]  }
  0x85   :  { %v1458_v15 = vld [vmem:[#allocation9 + $0x248] ss:$12 sps:$4 sm:$0xff]  }
  0x87   :  { %991 = vmatpush2.bf16.msra.mxu0 %v1417_v16  ;;  %1032 = vmatpush2.bf16.msra.mxu1 %v1420_v17  ;;  %v1459_v16 = vld [vmem:[#allocation9 + $0x8] ss:$12 sps:$4 sm:$0xff]  }
  0x88   :  { %992 = vmatprep.subr.bf16.mxu0 %v1425_v18  ;;  %1033 = vmatprep.subr.bf16.mxu1 %v1428_v19  ;;  %v1460_v17 = vld [vmem:[#allocation9 + $0x188] ss:$12 sps:$4 sm:$0xff]  }
  0x8b   :  { %993 = vmatpush2.bf16.msra.mxu0 %v1423_v20  ;;  %1034 = vmatpush2.bf16.msra.mxu1 %v1426_v21 }
  0x8c   :  { %1268 = vmatprep.subr.bf16.mxu0 %v1429_v22  ;;  %1290 = vmatprep.subr.bf16.mxu1 %v1430_v23 }
 0x106   :  { %v160_v24 = vpop.f32.mrf.mxu0  ;;  %v201_v25 = vpop.f32.mrf.mxu1 }
 0x108   :  { %v162_v26 = vpop.f32.mrf.mxu0  ;;  %v203_v27 = vpop.f32.mrf.mxu1 }
 0x10a   :  { %v164_v28 = vpop.f32.mrf.mxu0  ;;  %v205_v29 = vpop.f32.mrf.mxu1 }
 0x10c   :  { %v165_v30 = vpop.f32.mrf.mxu0  ;;  %v206_v31 = vpop.f32.mrf.mxu1 }
 0x10e   :  { %v266_v32 = vpop.f32.mrf.mxu0  ;;  %v307_v33 = vpop.f32.mrf.mxu1 }
 0x10f   :  { %v267_v34 = vadd.f32 %v266_v32, %v160_v24  ;;  %v308_v35 = vadd.f32 %v307_v33, %v201_v25  ;;  %v1127_v32 = vld [vmem:[%s1647_s5] sm:$0x7] }
 0x110   :  { %v268_v36 = vpop.f32.mrf.mxu0  ;;  %v309_v37 = vpop.f32.mrf.mxu1 }
 0x111   :  { %v269_v38 = vadd.f32 %v268_v36, %v162_v26  ;;  %v310_v39 = vadd.f32 %v309_v37, %v203_v27  ;;  %v314_v40 = vmax.f32 %v267_v34, 0.0  ;;  %v316_v41 = vmax.f32 %v308_v35, 0.0 }
 0x112   :  { %v270_v42 = vpop.f32.mrf.mxu0  ;;  %v311_v43 = vpop.f32.mrf.mxu1  ;;  %v1129_v26 = vlaneseq }
 0x113   :  { %v315_v44 = vmax.f32 %v269_v38, 0.0  ;;  %v317_v45 = vmax.f32 %v310_v39, 0.0  ;;  %v1628_v52 = vpack.c.bf16 %v314_v40, %v314_v40  ;;  %v1630_v53 = vpack.c.bf16 %v316_v41, %v316_v41 }
 0x114   :  { %v271_v46 = vpop.f32.mrf.mxu0  ;;  %v312_v47 = vpop.f32.mrf.mxu1  ;;  %v1130_v27 = vshrl.u32 %v1129_v26, 7 }
 0x115   :  { %v319_v48 = vpack.c.bf16 %v315_v44, %v315_v44  ;;  %v321_v49 = vpack.c.bf16 %v317_v45, %v317_v45 }
 0x116   :  { %v1135_v29 = vsub.s32 1, %v1130_v27  ;;  %v1131_v31 = vsub.s32 0, %v1130_v27  ;;  %v1139_v37 = vsub.s32 2, %v1130_v27 }
 0x117   :  { %994 = vmatprep.mubr.bf16.mxu0 %v319_v48  ;;  %1035 = vmatprep.mubr.bf16.mxu1 %v321_v49 }
 0x118   :  { %995 = vmatmul.mubr.bf16.vlgmr.msra.gmra.mxu0 %v1628_v52  ;;  %1036 = vmatmul.mubr.bf16.vlgmr.msra.gmra.mxu1 %v1630_v53  ;;  %v1136_v36 = vrot.slane %v1127_v32, %v1135_v29  ;;  %v1132_v41 = vrot.slane %v1127_v32, %v1131_v31 }
 0x119   :  { %1269 = vmatpush3.bf16.msra.mxu0 %v1431_v50  ;;  %1291 = vmatpush3.bf16.msra.mxu1 %v1432_v51 }
 0x11a   :  { %1076 = vmatprep.mubr.bf16.mxu0 %v319_v48  ;;  %1116 = vmatprep.mubr.bf16.mxu1 %v321_v49  ;;  %v1140_v48 = vrot.slane %v1127_v32, %v1139_v37 }
 0x11b   :  { %1270 = vmatprep.subr.bf16.mxu0 %v1433_v54  ;;  %1292 = vmatprep.subr.bf16.mxu1 %v1434_v55 }
 0x11d   :  { %1271 = vmatpush3.bf16.msra.mxu0 %v1435_v56  ;;  %1293 = vmatpush3.bf16.msra.mxu1 %v1436_v57 }
 0x11e   :  { %1272 = vmatprep.subr.bf16.mxu0 %v1437_v58  ;;  %1294 = vmatprep.subr.bf16.mxu1 %v1438_v59 }
 0x121   :  { %1273 = vmatpush3.bf16.msra.mxu0 %v1439_v60  ;;  %1295 = vmatpush3.bf16.msra.mxu1 %v1440_v61 }
 0x122   :  { %1274 = vmatprep.subr.bf16.mxu0 %v1441_v62  ;;  %1296 = vmatprep.subr.bf16.mxu1 %v1442_v63 }
 0x125   :  { %1275 = vmatpush3.bf16.msra.mxu0 %v1443_v0  ;;  %1297 = vmatpush3.bf16.msra.mxu1 %v1444_v1 }
 0x126   :  { %1276 = vmatprep.subr.bf16.mxu0 %v1445_v2  ;;  %1298 = vmatprep.subr.bf16.mxu1 %v1446_v3 }
 0x129   :  { %1277 = vmatpush3.bf16.msra.mxu0 %v1447_v4  ;;  %1299 = vmatpush3.bf16.msra.mxu1 %v1448_v5 }
 0x12a   :  { %1278 = vmatprep.subr.bf16.mxu0 %v1449_v6  ;;  %1300 = vmatprep.subr.bf16.mxu1 %v1450_v7 }
 0x12d   :  { %1279 = vmatpush3.bf16.msra.mxu0 %v1451_v8  ;;  %1301 = vmatpush3.bf16.msra.mxu1 %v1452_v9 }
 0x12e   :  { %1280 = vmatprep.subr.bf16.mxu0 %v1453_v10  ;;  %1302 = vmatprep.subr.bf16.mxu1 %v1454_v11 }
 0x131   :  { %1281 = vmatpush3.bf16.msra.mxu0 %v1455_v12  ;;  %1303 = vmatpush3.bf16.msra.mxu1 %v1456_v13 }
 0x132   :  { %1282 = vmatprep.subr.bf16.mxu0 %v1457_v14  ;;  %1304 = vmatprep.subr.bf16.mxu1 %v1458_v15 }
 0x135   :  { %1283 = vmatpush3.bf16.msra.mxu0 %v1459_v16  ;;  %1305 = vmatpush3.bf16.msra.mxu1 %v1460_v17 }
 0x138   :  { %1077 = vmatmul.mubr.bf16.vlgmr.msra.gmra.mxu0 %v1628_v52  ;;  %1117 = vmatmul.mubr.bf16.vlgmr.msra.gmra.mxu1 %v1630_v53 }
 0x1d8   :  { %v996_v18 = vpop.f32.mrf.mxu0  ;;  %v1037_v19 = vpop.f32.mrf.mxu1 }
 0x1d9   :  { %v1038_v30 = vadd.f32 %v1037_v19, %v996_v18 }
 0x1da   :  { %v998_v20 = vpop.f32.mrf.mxu0  ;;  %v1039_v21 = vpop.f32.mrf.mxu1 }
 0x1db   :  { %v1040_v28 = vadd.f32 %v1039_v21, %v998_v20  ;;  %v1124_v40 = vmax.f32 %v1038_v30, 0.0 }
 0x1dc   :  { %v1000_v22 = vpop.f32.mrf.mxu0  ;;  %v1041_v23 = vpop.f32.mrf.mxu1 }
 0x1dd   :  { %v1125_v35 = vmax.f32 %v1040_v28, 0.0  ;;  %v1144_v51 = vmul.f32 %v1132_v41, %v1124_v40 }
 0x1de   :  { %v1001_v24 = vpop.f32.mrf.mxu0  ;;  %v1042_v25 = vpop.f32.mrf.mxu1 }
 0x1df   :  { %v1145_v46 = vmul.f32 %v1136_v36, %v1125_v35 }
 0x1e1   :  { %v1147_v54 = vadd.f32 %v1145_v46, %v1144_v51 }
 0x1f8   :  { %v1284_v33 = vpop.f32.mrf.mxu0  ;;  %v1306_v34 = vpop.f32.mrf.mxu1 }
 0x1fa   :  { %v1285_v38 = vpop.f32.mrf.mxu0  ;;  %v1307_v39 = vpop.f32.mrf.mxu1 }
 0x1fb   :  { %v1286_v42 = vadd.f32 %v1285_v38, %v1284_v33  ;;  %v1308_v43 = vadd.f32 %v1307_v39, %v1306_v34 }
 0x1fc   :  { %v1287_v44 = vpop.f32.mrf.mxu0  ;;  %v1309_v45 = vpop.f32.mrf.mxu1 }
 0x1fd   :  { %v1119_v47 = vadd.f32 %v1308_v43, %v1286_v42 }
 0x1fe   :  { %v1288_v49 = vpop.f32.mrf.mxu0  ;;  %v1310_v50 = vpop.f32.mrf.mxu1 }
 0x1ff   :  { %v1126_v52 = vmax.f32 %v1119_v47, 0.0 }
 0x201   :  { %v1146_v53 = vmul.f32 %v1140_v48, %v1126_v52 }
 0x203   :  { %v1148_v55 = vadd.f32 %v1147_v54, %v1146_v53 }
 0x205   :  { %1149 = vadd.xlane.f32.xlu0 %v1148_v55 }
 0x28e   :  { %v1150_v56 = vpop.xlane.xlu0 %1149 }
 0x28f   :  { %1152 = vst.msk [vmem:[%s1648_s6] sm:$0xff] %vm1151_vm4, %v1150_v56 }
 0x290   :  { %1157 = vsyncpa [#allocation3], 1 }
 0x291   :  { %1158 = vsyncpa [#allocation5], 1 }
 0x292   :  { %1159 = vsyncpa [#allocation8], 1 }

</bundles_post_ra>
